<compile_context>
chip_gen: v5e
topology: v5e:2x2
jax: 0.10.0
libtpu: 0.0.40
codegen_flags: <defaults>
</compile_context>

<pallas_src>
import math
import jax
import jax.numpy as jnp
from jax.experimental import pallas as pl
from jax.experimental.pallas import tpu as pltpu

# ---- static graph from the module: src=[0,0,0,1,2,1], dst=[1,2,3,2,3,3] ----
SRC = (0, 0, 0, 1, 2, 1)
DST = (1, 2, 3, 2, 3, 3)
N_NODES = 4
N_EDGES = 6

NODE_IN = 6       # node_input_dim
HID = 8           # GNN hidden size (layer1 out, per node)
NODE_OUT = 8      # node_output_dim (layer2 out, per node)
ACTION_DIM = 2
LATENT = 64

GNN_IN = N_NODES * NODE_IN       # 24  (concatenated node inputs)
GNN_HID = N_NODES * HID          # 32  (concatenated layer-1 outputs)
GNN_OUT = N_NODES * NODE_OUT     # 32  (layer-2 outputs == common_layer in)
HEAD_DIM = ACTION_DIM + 1        # 3   ([mean0, mean1, value])
OUT_ROWS = ACTION_DIM + 2        # 4   ([act0, act1, value, logprob])

LANE_TILE = 256                  # lane granularity: multiple of 128, fills 256-wide MXU
LOG_2PI = math.log(2.0 * math.pi)


# =============================== Pallas kernel ===============================

def policy_kernel(nodes_ref, eps_ref,
                  w1_ref, w2_ref, wc_ref, wac_ref, whead_ref,
                  b1_ref, b2_ref, bc_ref, bac_ref, bhead_ref,
                  std_ref, lstd_ref, out_ref):
    nodes = nodes_ref[...]                               # (24, TB) bf16
    eps = eps_ref[...]                                   # (2, TB)  f32

    # GNN layer 1 (self-loops + all edge messages + folded biases), lane-dense
    h1 = jnp.tanh(
        jnp.dot(w1_ref[...], nodes, preferred_element_type=jnp.float32)
        + b1_ref[...])                                   # (32, TB) f32

    # GNN layer 2 (fused), then the outer tanh from batch_gnn_process
    g = jnp.tanh(
        jnp.dot(w2_ref[...], h1.astype(jnp.bfloat16),
                preferred_element_type=jnp.float32)
        + b2_ref[...])                                   # (32, TB)

    # shared latent (common_layer)
    shared = jnp.tanh(
        jnp.dot(wc_ref[...], g.astype(jnp.bfloat16),
                preferred_element_type=jnp.float32)
        + bc_ref[...])                                   # (64, TB)

    # actor + critic latent layers fused into one (128,64) matmul
    lat = jnp.tanh(
        jnp.dot(wac_ref[...], shared.astype(jnp.bfloat16),
                preferred_element_type=jnp.float32)
        + bac_ref[...])                                  # (128, TB) = [latent_pi ; latent_vf]

    # action-mean + value heads fused via a block-diagonal (3,128) matmul
    head = (jnp.dot(whead_ref[...], lat.astype(jnp.bfloat16),
                    preferred_element_type=jnp.float32)
            + bhead_ref[...])                            # (3, TB)
    mean = head[0:ACTION_DIM, :]                         # (2, TB)
    value = head[ACTION_DIM:ACTION_DIM + 1, :]           # (1, TB)

    std = std_ref[...]                                   # (2, 1)  exp(log_std), precomputed
    log_std = lstd_ref[...]                              # (2, 1)
    actions = mean + std * eps                           # rsample with supplied noise

    # Normal.log_prob(actions) with (actions - mean)/std == eps by construction
    lp = jnp.sum(-0.5 * eps * eps - log_std - 0.5 * LOG_2PI,
                 axis=0, keepdims=True)                  # (1, TB)

    # direct lane-dense stores (no concatenate / masked partial store)
    out_ref[0:ACTION_DIM, :] = actions
    out_ref[ACTION_DIM:ACTION_DIM + 1, :] = value
    out_ref[ACTION_DIM + 1:ACTION_DIM + 2, :] = lp


# ============================ parameter handling =============================

def init_params(key):
    """Deterministic synthetic init mirroring the module's init schemes (raw layout)."""
    gain = 5.0 / 3.0  # nn.init.calculate_gain('tanh')
    keys = jax.random.split(key, 14)

    def xavier(k, nodes, fin, fout):
        bound = gain * math.sqrt(6.0 / (fin + fout))
        return jax.random.uniform(k, (nodes, fin, fout), jnp.float32, -bound, bound)

    def edge_w(k, edges, fin, fout):
        b = 1.0 / math.sqrt(fin)
        return jax.random.uniform(k, (edges, fin, fout), jnp.float32, -b, b)

    def linear(kw, kb, fin, fout):
        b = 1.0 / math.sqrt(fin)
        W = jax.random.uniform(kw, (fin, fout), jnp.float32, -b, b)
        bias = jax.random.uniform(kb, (1, fout), jnp.float32, -b, b)
        return W, bias

    lw1 = xavier(keys[0], N_NODES, NODE_IN, HID)
    W1 = edge_w(keys[1], N_EDGES, NODE_IN, HID)
    mb1 = jnp.zeros((N_EDGES, 1, HID), jnp.float32)
    hb1 = jnp.zeros((N_NODES, 1, HID), jnp.float32)

    lw2 = xavier(keys[2], N_NODES, HID, NODE_OUT)
    W2 = edge_w(keys[3], N_EDGES, HID, NODE_OUT)
    mb2 = jnp.zeros((N_EDGES, 1, NODE_OUT), jnp.float32)
    hb2 = jnp.zeros((N_NODES, 1, NODE_OUT), jnp.float32)

    cW, cb = linear(keys[4], keys[5], GNN_OUT, LATENT)
    aW, ab = linear(keys[6], keys[7], LATENT, LATENT)
    anW, anb = linear(keys[8], keys[9], LATENT, ACTION_DIM)
    lstd = jnp.zeros((1, ACTION_DIM), jnp.float32)   # log_std_init = 0.0
    crW, crb = linear(keys[10], keys[11], LATENT, LATENT)
    vW, vb = linear(keys[12], keys[13], LATENT, 1)

    return (lw1, W1, mb1, hb1, lw2, W2, mb2, hb2,
            cW, cb, aW, ab, anW, anb, lstd, crW, crb, vW, vb)


def _fuse_gnn_layer(lw, W, mb, hb, in_feat, out_feat):
    """Fold self-loop + edge weights into one block matrix over concatenated node feats."""
    Wbig = jnp.zeros((N_NODES * in_feat, N_NODES * out_feat), jnp.float32)
    for n in range(N_NODES):
        Wbig = Wbig.at[n * in_feat:(n + 1) * in_feat,
                       n * out_feat:(n + 1) * out_feat].set(lw[n])
    for e in range(N_EDGES):
        s, d = SRC[e], DST[e]
        Wbig = Wbig.at[s * in_feat:(s + 1) * in_feat,
                       d * out_feat:(d + 1) * out_feat].add(W[e])
    bias = jnp.zeros((N_NODES * out_feat,), jnp.float32)
    for n in range(N_NODES):
        bias = bias.at[n * out_feat:(n + 1) * out_feat].add(hb[n, 0])
    for e in range(N_EDGES):
        d = DST[e]
        bias = bias.at[d * out_feat:(d + 1) * out_feat].add(mb[e, 0])
    return Wbig, bias


def pack_params(params):
    """Host-side one-time packing: transposed bf16 weight slabs + f32 bias columns."""
    (lw1, W1, mb1, hb1, lw2, W2, mb2, hb2,
     cW, cb, aW, ab, anW, anb, lstd, crW, crb, vW, vb) = params

    w1, b1 = _fuse_gnn_layer(lw1, W1, mb1, hb1, NODE_IN, HID)     # (24,32), (32,)
    w2, b2 = _fuse_gnn_layer(lw2, W2, mb2, hb2, HID, NODE_OUT)    # (32,32), (32,)

    wac = jnp.concatenate([aW, crW], axis=1)                      # (64, 128)
    bac = jnp.concatenate([ab[0], crb[0]], axis=0)                # (128,)

    whead = jnp.zeros((2 * LATENT, HEAD_DIM), jnp.float32)        # (128, 3) block-diag
    whead = whead.at[:LATENT, :ACTION_DIM].set(anW)
    whead = whead.at[LATENT:, ACTION_DIM:].set(vW)
    bhead = jnp.concatenate([anb[0], vb[0]], axis=0)              # (3,)

    bf16 = jnp.bfloat16
    packed = dict(
        w1=w1.T.astype(bf16),                 # (32, 24)
        w2=w2.T.astype(bf16),                 # (32, 32)
        wc=cW.T.astype(bf16),                 # (64, 32)
        wac=wac.T.astype(bf16),               # (128, 64)
        whead=whead.T.astype(bf16),           # (3, 128)
        b1=b1.reshape(GNN_HID, 1),
        b2=b2.reshape(GNN_OUT, 1),
        bc=cb[0].reshape(LATENT, 1),
        bac=bac.reshape(2 * LATENT, 1),
        bhead=bhead.reshape(HEAD_DIM, 1),
        std=jnp.exp(lstd[0]).reshape(ACTION_DIM, 1),   # precomputed exp(log_std)
        lstd=lstd[0].reshape(ACTION_DIM, 1),
    )
    return packed


# ================================= wrapper ===================================

def _round_up(a, m):
    return ((a + m - 1) // m) * m


def forward(packed, obs, t_1_info, t_2_info, eps, *, block_b=2048):
    """Equivalent of Trial_GNN_ActorCriticPolicy.forward(obs, t1, t2, mode='sample').

    obs: (B, 8), t_1_info/t_2_info: (B, 6), eps: (B, ACTION_DIM) standard-normal noise
    (sampling noise supplied explicitly so the run is deterministic / checkable).
    Returns (actions (B,2), values (B,1), log_probs (B,)).
    """
    obs = obs.astype(jnp.float32)
    t_1_info = t_1_info.astype(jnp.float32)
    t_2_info = t_2_info.astype(jnp.float32)
    eps = eps.astype(jnp.float32)
    B = obs.shape[0]

    # batch_gnn_process glue, feature-major (batch on lanes): node order is
    # [target_info, t_1_info, t_2_info, obs[:, 0:6]] stacked on the sublane axis.
    target_pos = obs[:, 6:8]
    z = jnp.zeros_like(target_pos)
    target_info = jnp.concatenate([target_pos, z, z], axis=1)               # (B, 6)
    nodes = jnp.concatenate([target_info, t_1_info, t_2_info, obs[:, 0:6]], axis=1)
    assert nodes.shape == (B, GNN_IN)

    nodes_t = nodes.T.astype(jnp.bfloat16)    # (24, B) bf16 matmul operand
    eps_t = eps.T                             # (2, B)  f32 (exact log-prob / rsample)

    # batch tile: multiple of 256 lanes; keep >=2 grid blocks when the batch allows
    # so v7x's two TensorCores both get work (harmless on v5e/v6e).
    TB = _round_up(min(block_b, max(B, 1)), LANE_TILE)
    Bp = _round_up(B, TB)
    if Bp // TB < 2 and _round_up(B, LANE_TILE) >= 2 * LANE_TILE:
        TB = _round_up(_round_up(B, LANE_TILE) // 2, LANE_TILE)
        Bp = _round_up(B, TB)
    nblk = Bp // TB

    if Bp != B:   # pad lanes so no partial blocks ever reach HBM
        nodes_t = jnp.pad(nodes_t, ((0, 0), (0, Bp - B)))
        eps_t = jnp.pad(eps_t, ((0, 0), (0, Bp - B)))

    const = lambda i: (0, 0)   # resident weights / biases
    out = pl.pallas_call(
        policy_kernel,
        out_shape=jax.ShapeDtypeStruct((OUT_ROWS, Bp), jnp.float32),
        grid=(nblk,),
        in_specs=[
            pl.BlockSpec((GNN_IN, TB), lambda i: (0, i)),         # nodes (lane-tiled batch)
            pl.BlockSpec((ACTION_DIM, TB), lambda i: (0, i)),     # eps
            pl.BlockSpec((GNN_HID, GNN_IN), const),               # w1^T
            pl.BlockSpec((GNN_OUT, GNN_HID), const),              # w2^T
            pl.BlockSpec((LATENT, GNN_OUT), const),               # wc^T
            pl.BlockSpec((2 * LATENT, LATENT), const),            # wac^T
            pl.BlockSpec((HEAD_DIM, 2 * LATENT), const),          # whead^T
            pl.BlockSpec((GNN_HID, 1), const),                    # b1
            pl.BlockSpec((GNN_OUT, 1), const),                    # b2
            pl.BlockSpec((LATENT, 1), const),                     # bc
            pl.BlockSpec((2 * LATENT, 1), const),                 # bac
            pl.BlockSpec((HEAD_DIM, 1), const),                   # bhead
            pl.BlockSpec((ACTION_DIM, 1), const),                 # std
            pl.BlockSpec((ACTION_DIM, 1), const),                 # log_std
        ],
        out_specs=pl.BlockSpec((OUT_ROWS, TB), lambda i: (0, i)),
        compiler_params=pltpu.CompilerParams(
            dimension_semantics=("parallel",)),
    )(nodes_t, eps_t,
      packed["w1"], packed["w2"], packed["wc"], packed["wac"], packed["whead"],
      packed["b1"], packed["b2"], packed["bc"], packed["bac"], packed["bhead"],
      packed["std"], packed["lstd"])

    out = out[:, :B]
    actions = out[0:ACTION_DIM, :].T                      # (B, 2)
    values = out[ACTION_DIM:ACTION_DIM + 1, :].T          # (B, 1)
    log_probs = out[ACTION_DIM + 1, :]                    # (B,)
    return actions, values, log_probs


# ============================ pure-JAX reference =============================

def reference_forward(params, obs, t_1_info, t_2_info, eps):
    """Unfused f32 reference mirroring the torch module, for a correctness check."""
    (lw1, W1, mb1, hb1, lw2, W2, mb2, hb2,
     cW, cb, aW, ab, anW, anb, lstd, crW, crb, vW, vb) = params
    obs = obs.astype(jnp.float32)
    t_1_info = t_1_info.astype(jnp.float32)
    t_2_info = t_2_info.astype(jnp.float32)
    eps = eps.astype(jnp.float32)

    target_pos = obs[:, 6:8]
    z = jnp.zeros_like(target_pos)
    target_info = jnp.concatenate([target_pos, z, z], axis=1)
    h = [target_info, t_1_info, t_2_info, obs[:, 0:6]]

    def layer(hh, lw, W, mb, hb):
        out = [hh[n] @ lw[n] + hb[n] for n in range(N_NODES)]
        for e in range(N_EDGES):
            out[DST[e]] = out[DST[e]] + hh[SRC[e]] @ W[e] + mb[e]
        return out

    h1 = [jnp.tanh(o) for o in layer(h, lw1, W1, mb1, hb1)]
    g = [jnp.tanh(o) for o in layer(h1, lw2, W2, mb2, hb2)]
    feat = jnp.concatenate(g, axis=-1)

    shared = jnp.tanh(feat @ cW + cb)
    latent_pi = jnp.tanh(shared @ aW + ab)
    mean = latent_pi @ anW + anb
    std = jnp.exp(lstd)
    actions = mean + std * eps
    lp = jnp.sum(-0.5 * ((actions - mean) / std) ** 2 - lstd - 0.5 * LOG_2PI, axis=-1)
    latent_vf = jnp.tanh(shared @ crW + crb)
    values = latent_vf @ vW + vb
    return actions, values, lp


# =================================== main ====================================

def _check(actions, values, log_probs, params, obs, t1, t2, eps):
    ra, rv, rlp = reference_forward(params, obs, t1, t2, eps)
    # bf16 MXU operands -> slightly relaxed tolerance on mean/value paths
    assert jnp.allclose(actions, ra, atol=5e-2, rtol=5e-2)
    assert jnp.allclose(values, rv, atol=5e-2, rtol=5e-2)
    # log-prob depends only on f32 eps/log_std -> tight
    assert jnp.allclose(log_probs, rlp, atol=1e-4, rtol=1e-4)


if __name__ == "__main__":
    key = jax.random.PRNGKey(0)
    kp, ko, k1, k2, ke = jax.random.split(key, 5)

    params = init_params(kp)
    packed = pack_params(params)

    # --- small batch (single grid block) ---
    B = 16
    obs = jax.random.normal(ko, (B, 8), jnp.float32)        # [state(6), target_pos(2)]
    t_1_info = jax.random.normal(k1, (B, NODE_IN), jnp.float32)
    t_2_info = jax.random.normal(k2, (B, NODE_IN), jnp.float32)
    eps = jax.random.normal(ke, (B, ACTION_DIM), jnp.float32)

    actions, values, log_probs = forward(packed, obs, t_1_info, t_2_info, eps)
    jax.block_until_ready((actions, values, log_probs))
    assert actions.shape == (B, ACTION_DIM)
    assert values.shape == (B, 1)
    assert log_probs.shape == (B,)
    _check(actions, values, log_probs, params, obs, t_1_info, t_2_info, eps)

    # --- multi-block grid + batch padding path ---
    B2 = 300
    ko2, k12, k22, ke2 = jax.random.split(jax.random.PRNGKey(1), 4)
    obs2 = jax.random.normal(ko2, (B2, 8), jnp.float32)
    t1b = jax.random.normal(k12, (B2, NODE_IN), jnp.float32)
    t2b = jax.random.normal(k22, (B2, NODE_IN), jnp.float32)
    eps2 = jax.random.normal(ke2, (B2, ACTION_DIM), jnp.float32)

    a2, v2, lp2 = forward(packed, obs2, t1b, t2b, eps2, block_b=128)  # -> 2 lane blocks
    jax.block_until_ready((a2, v2, lp2))
    assert a2.shape == (B2, ACTION_DIM) and v2.shape == (B2, 1) and lp2.shape == (B2,)
    _check(a2, v2, lp2, params, obs2, t1b, t2b, eps2)

    print("KERNEL_OK")
</pallas_src>

<mosaic_0001>
module attributes {stable_mosaic.version = 11 : i64} {
  func.func @policy_kernel(%arg0: i32, %arg1: memref<24x256xbf16, #tpu.memory_space<vmem>>, %arg2: memref<2x256xf32, #tpu.memory_space<vmem>>, %arg3: memref<32x24xbf16, #tpu.memory_space<vmem>>, %arg4: memref<32x32xbf16, #tpu.memory_space<vmem>>, %arg5: memref<64x32xbf16, #tpu.memory_space<vmem>>, %arg6: memref<128x64xbf16, #tpu.memory_space<vmem>>, %arg7: memref<3x128xbf16, #tpu.memory_space<vmem>>, %arg8: memref<32x1xf32, #tpu.memory_space<vmem>>, %arg9: memref<32x1xf32, #tpu.memory_space<vmem>>, %arg10: memref<64x1xf32, #tpu.memory_space<vmem>>, %arg11: memref<128x1xf32, #tpu.memory_space<vmem>>, %arg12: memref<3x1xf32, #tpu.memory_space<vmem>>, %arg13: memref<2x1xf32, #tpu.memory_space<vmem>>, %arg14: memref<2x1xf32, #tpu.memory_space<vmem>>, %arg15: memref<4x256xf32, #tpu.memory_space<vmem>>) attributes {dimension_semantics = [#tpu.dimension_semantics<parallel>], iteration_bounds = array<i64: 1>, scalar_prefetch = 0 : i64, scratch_operands = 0 : i64, tpu.core_type = #tpu.core_type<tc>, window_params = [{transform_indices = @transform_0, window_bounds = array<i64: 24, 256>}, {transform_indices = @transform_1, window_bounds = array<i64: 2, 256>}, {pipeline_mode = #tpu.pipeline_mode<synchronous>, transform_indices = @transform_2, window_bounds = array<i64: 32, 24>}, {pipeline_mode = #tpu.pipeline_mode<synchronous>, transform_indices = @transform_3, window_bounds = array<i64: 32, 32>}, {pipeline_mode = #tpu.pipeline_mode<synchronous>, transform_indices = @transform_4, window_bounds = array<i64: 64, 32>}, {pipeline_mode = #tpu.pipeline_mode<synchronous>, transform_indices = @transform_5, window_bounds = array<i64: 128, 64>}, {pipeline_mode = #tpu.pipeline_mode<synchronous>, transform_indices = @transform_6, window_bounds = array<i64: 3, 128>}, {pipeline_mode = #tpu.pipeline_mode<synchronous>, transform_indices = @transform_7, window_bounds = array<i64: 32, 1>}, {pipeline_mode = #tpu.pipeline_mode<synchronous>, transform_indices = @transform_8, window_bounds = array<i64: 32, 1>}, {pipeline_mode = #tpu.pipeline_mode<synchronous>, transform_indices = @transform_9, window_bounds = array<i64: 64, 1>}, {pipeline_mode = #tpu.pipeline_mode<synchronous>, transform_indices = @transform_10, window_bounds = array<i64: 128, 1>}, {pipeline_mode = #tpu.pipeline_mode<synchronous>, transform_indices = @transform_11, window_bounds = array<i64: 3, 1>}, {pipeline_mode = #tpu.pipeline_mode<synchronous>, transform_indices = @transform_12, window_bounds = array<i64: 2, 1>}, {pipeline_mode = #tpu.pipeline_mode<synchronous>, transform_indices = @transform_13, window_bounds = array<i64: 2, 1>}, {transform_indices = @transform_14, window_bounds = array<i64: 4, 256>}]} {
    %c0 = arith.constant 0 : index
    %c0_0 = arith.constant 0 : index
    %0 = vector.load %arg1[%c0, %c0_0] : memref<24x256xbf16, #tpu.memory_space<vmem>>, vector<24x256xbf16>
    %c0_1 = arith.constant 0 : index
    %c0_2 = arith.constant 0 : index
    %1 = vector.load %arg2[%c0_1, %c0_2] : memref<2x256xf32, #tpu.memory_space<vmem>>, vector<2x256xf32>
    %c0_3 = arith.constant 0 : index
    %c0_4 = arith.constant 0 : index
    %2 = vector.load %arg3[%c0_3, %c0_4] : memref<32x24xbf16, #tpu.memory_space<vmem>>, vector<32x24xbf16>
    %cst = arith.constant dense<0.000000e+00> : vector<32x256xf32>
    %3 = tpu.matmul %2, %0, %cst {dimension_numbers = #tpu.dot_dimension_numbers<[1], [0], [0], [1], [0, 0, 1, 1], [], []>} : vector<32x24xbf16>, vector<24x256xbf16>, vector<32x256xf32> -> vector<32x256xf32>
    %c0_5 = arith.constant 0 : index
    %c0_6 = arith.constant 0 : index
    %4 = vector.load %arg8[%c0_5, %c0_6] : memref<32x1xf32, #tpu.memory_space<vmem>>, vector<32x1xf32>
    %5 = vector.broadcast %4 : vector<32x1xf32> to vector<32x256xf32>
    %6 = arith.addf %3, %5 : vector<32x256xf32>
    %7 = math.tanh %6 : vector<32x256xf32>
    %c0_7 = arith.constant 0 : index
    %c0_8 = arith.constant 0 : index
    %8 = vector.load %arg4[%c0_7, %c0_8] : memref<32x32xbf16, #tpu.memory_space<vmem>>, vector<32x32xbf16>
    %9 = arith.truncf %7 : vector<32x256xf32> to vector<32x256xbf16>
    %cst_9 = arith.constant dense<0.000000e+00> : vector<32x256xf32>
    %10 = tpu.matmul %8, %9, %cst_9 {dimension_numbers = #tpu.dot_dimension_numbers<[1], [0], [0], [1], [0, 0, 1, 1], [], []>} : vector<32x32xbf16>, vector<32x256xbf16>, vector<32x256xf32> -> vector<32x256xf32>
    %c0_10 = arith.constant 0 : index
    %c0_11 = arith.constant 0 : index
    %11 = vector.load %arg9[%c0_10, %c0_11] : memref<32x1xf32, #tpu.memory_space<vmem>>, vector<32x1xf32>
    %12 = vector.broadcast %11 : vector<32x1xf32> to vector<32x256xf32>
    %13 = arith.addf %10, %12 : vector<32x256xf32>
    %14 = math.tanh %13 : vector<32x256xf32>
    %c0_12 = arith.constant 0 : index
    %c0_13 = arith.constant 0 : index
    %15 = vector.load %arg5[%c0_12, %c0_13] : memref<64x32xbf16, #tpu.memory_space<vmem>>, vector<64x32xbf16>
    %16 = arith.truncf %14 : vector<32x256xf32> to vector<32x256xbf16>
    %cst_14 = arith.constant dense<0.000000e+00> : vector<64x256xf32>
    %17 = tpu.matmul %15, %16, %cst_14 {dimension_numbers = #tpu.dot_dimension_numbers<[1], [0], [0], [1], [0, 0, 1, 1], [], []>} : vector<64x32xbf16>, vector<32x256xbf16>, vector<64x256xf32> -> vector<64x256xf32>
    %c0_15 = arith.constant 0 : index
    %c0_16 = arith.constant 0 : index
    %18 = vector.load %arg10[%c0_15, %c0_16] : memref<64x1xf32, #tpu.memory_space<vmem>>, vector<64x1xf32>
    %19 = vector.broadcast %18 : vector<64x1xf32> to vector<64x256xf32>
    %20 = arith.addf %17, %19 : vector<64x256xf32>
    %21 = math.tanh %20 : vector<64x256xf32>
    %c0_17 = arith.constant 0 : index
    %c0_18 = arith.constant 0 : index
    %22 = vector.load %arg6[%c0_17, %c0_18] : memref<128x64xbf16, #tpu.memory_space<vmem>>, vector<128x64xbf16>
    %23 = arith.truncf %21 : vector<64x256xf32> to vector<64x256xbf16>
    %cst_19 = arith.constant dense<0.000000e+00> : vector<128x256xf32>
    %24 = tpu.matmul %22, %23, %cst_19 {dimension_numbers = #tpu.dot_dimension_numbers<[1], [0], [0], [1], [0, 0, 1, 1], [], []>} : vector<128x64xbf16>, vector<64x256xbf16>, vector<128x256xf32> -> vector<128x256xf32>
    %c0_20 = arith.constant 0 : index
    %c0_21 = arith.constant 0 : index
    %25 = vector.load %arg11[%c0_20, %c0_21] : memref<128x1xf32, #tpu.memory_space<vmem>>, vector<128x1xf32>
    %26 = vector.broadcast %25 : vector<128x1xf32> to vector<128x256xf32>
    %27 = arith.addf %24, %26 : vector<128x256xf32>
    %28 = math.tanh %27 : vector<128x256xf32>
    %c0_22 = arith.constant 0 : index
    %c0_23 = arith.constant 0 : index
    %29 = vector.load %arg7[%c0_22, %c0_23] : memref<3x128xbf16, #tpu.memory_space<vmem>>, vector<3x128xbf16>
    %30 = arith.truncf %28 : vector<128x256xf32> to vector<128x256xbf16>
    %cst_24 = arith.constant dense<0.000000e+00> : vector<3x256xf32>
    %31 = tpu.matmul %29, %30, %cst_24 {dimension_numbers = #tpu.dot_dimension_numbers<[1], [0], [0], [1], [0, 0, 1, 1], [], []>} : vector<3x128xbf16>, vector<128x256xbf16>, vector<3x256xf32> -> vector<3x256xf32>
    %c0_25 = arith.constant 0 : index
    %c0_26 = arith.constant 0 : index
    %32 = vector.load %arg12[%c0_25, %c0_26] : memref<3x1xf32, #tpu.memory_space<vmem>>, vector<3x1xf32>
    %33 = vector.broadcast %32 : vector<3x1xf32> to vector<3x256xf32>
    %34 = arith.addf %31, %33 : vector<3x256xf32>
    %35 = vector.extract_strided_slice %34 {offsets = [0, 0], sizes = [2, 256], strides = [1, 1]} : vector<3x256xf32> to vector<2x256xf32>
    %36 = vector.extract_strided_slice %34 {offsets = [2, 0], sizes = [1, 256], strides = [1, 1]} : vector<3x256xf32> to vector<1x256xf32>
    %c0_27 = arith.constant 0 : index
    %c0_28 = arith.constant 0 : index
    %37 = vector.load %arg13[%c0_27, %c0_28] : memref<2x1xf32, #tpu.memory_space<vmem>>, vector<2x1xf32>
    %c0_29 = arith.constant 0 : index
    %c0_30 = arith.constant 0 : index
    %38 = vector.load %arg14[%c0_29, %c0_30] : memref<2x1xf32, #tpu.memory_space<vmem>>, vector<2x1xf32>
    %39 = vector.broadcast %37 : vector<2x1xf32> to vector<2x256xf32>
    %40 = arith.mulf %39, %1 : vector<2x256xf32>
    %41 = arith.addf %35, %40 : vector<2x256xf32>
    %cst_31 = arith.constant -5.000000e-01 : f32
    %42 = vector.broadcast %cst_31 : f32 to vector<2x256xf32>
    %43 = arith.mulf %42, %1 : vector<2x256xf32>
    %44 = arith.mulf %43, %1 : vector<2x256xf32>
    %45 = vector.broadcast %38 : vector<2x1xf32> to vector<2x256xf32>
    %46 = arith.subf %44, %45 : vector<2x256xf32>
    %cst_32 = arith.constant 0.918938517 : f32
    %47 = vector.broadcast %cst_32 : f32 to vector<2x256xf32>
    %48 = arith.subf %46, %47 : vector<2x256xf32>
    %cst_33 = arith.constant dense<0.000000e+00> : vector<256xf32>
    %49 = vector.multi_reduction <add>, %48, %cst_33 [0] : vector<2x256xf32> to vector<256xf32>
    %50 = vector.shape_cast %49 : vector<256xf32> to vector<1x256xf32>
    %c0_34 = arith.constant 0 : index
    %c0_35 = arith.constant 0 : index
    %51 = vector.load %arg15[%c0_34, %c0_35] : memref<4x256xf32, #tpu.memory_space<vmem>>, vector<2x256xf32>
    tpu.vector_store %arg15[%c0_34, %c0_35], %41 {strides = array<i32>} : memref<4x256xf32, #tpu.memory_space<vmem>>, vector<2x256xf32>,
    %c2 = arith.constant 2 : index
    %c0_36 = arith.constant 0 : index
    %52 = vector.load %arg15[%c2, %c0_36] : memref<4x256xf32, #tpu.memory_space<vmem>>, vector<1x256xf32>
    tpu.vector_store %arg15[%c2, %c0_36], %36 {strides = array<i32>} : memref<4x256xf32, #tpu.memory_space<vmem>>, vector<1x256xf32>,
    %c3 = arith.constant 3 : index
    %c0_37 = arith.constant 0 : index
    %53 = vector.load %arg15[%c3, %c0_37] : memref<4x256xf32, #tpu.memory_space<vmem>>, vector<1x256xf32>
    tpu.vector_store %arg15[%c3, %c0_37], %50 {strides = array<i32>} : memref<4x256xf32, #tpu.memory_space<vmem>>, vector<1x256xf32>,
    return
  }
  func.func @transform_0(%arg0: i32) -> (i32, i32) {
    %c0_i32 = arith.constant 0 : i32
    %c0_i32_0 = arith.constant 0 : i32
    return %c0_i32, %arg0 : i32, i32
  }
  func.func @transform_1(%arg0: i32) -> (i32, i32) {
    %c0_i32 = arith.constant 0 : i32
    %c0_i32_0 = arith.constant 0 : i32
    return %c0_i32, %arg0 : i32, i32
  }
  func.func @transform_2(%arg0: i32) -> (i32, i32) {
    %c0_i32 = arith.constant 0 : i32
    %c0_i32_0 = arith.constant 0 : i32
    %c0_i32_1 = arith.constant 0 : i32
    return %c0_i32, %c0_i32_0 : i32, i32
  }
  func.func @transform_3(%arg0: i32) -> (i32, i32) {
    %c0_i32 = arith.constant 0 : i32
    %c0_i32_0 = arith.constant 0 : i32
    %c0_i32_1 = arith.constant 0 : i32
    return %c0_i32, %c0_i32_0 : i32, i32
  }
  func.func @transform_4(%arg0: i32) -> (i32, i32) {
    %c0_i32 = arith.constant 0 : i32
    %c0_i32_0 = arith.constant 0 : i32
    %c0_i32_1 = arith.constant 0 : i32
    return %c0_i32, %c0_i32_0 : i32, i32
  }
  func.func @transform_5(%arg0: i32) -> (i32, i32) {
    %c0_i32 = arith.constant 0 : i32
    %c0_i32_0 = arith.constant 0 : i32
    %c0_i32_1 = arith.constant 0 : i32
    return %c0_i32, %c0_i32_0 : i32, i32
  }
  func.func @transform_6(%arg0: i32) -> (i32, i32) {
    %c0_i32 = arith.constant 0 : i32
    %c0_i32_0 = arith.constant 0 : i32
    %c0_i32_1 = arith.constant 0 : i32
    return %c0_i32, %c0_i32_0 : i32, i32
  }
  func.func @transform_7(%arg0: i32) -> (i32, i32) {
    %c0_i32 = arith.constant 0 : i32
    %c0_i32_0 = arith.constant 0 : i32
    %c0_i32_1 = arith.constant 0 : i32
    return %c0_i32, %c0_i32_0 : i32, i32
  }
  func.func @transform_8(%arg0: i32) -> (i32, i32) {
    %c0_i32 = arith.constant 0 : i32
    %c0_i32_0 = arith.constant 0 : i32
    %c0_i32_1 = arith.constant 0 : i32
    return %c0_i32, %c0_i32_0 : i32, i32
  }
  func.func @transform_9(%arg0: i32) -> (i32, i32) {
    %c0_i32 = arith.constant 0 : i32
    %c0_i32_0 = arith.constant 0 : i32
    %c0_i32_1 = arith.constant 0 : i32
    return %c0_i32, %c0_i32_0 : i32, i32
  }
  func.func @transform_10(%arg0: i32) -> (i32, i32) {
    %c0_i32 = arith.constant 0 : i32
    %c0_i32_0 = arith.constant 0 : i32
    %c0_i32_1 = arith.constant 0 : i32
    return %c0_i32, %c0_i32_0 : i32, i32
  }
  func.func @transform_11(%arg0: i32) -> (i32, i32) {
    %c0_i32 = arith.constant 0 : i32
    %c0_i32_0 = arith.constant 0 : i32
    %c0_i32_1 = arith.constant 0 : i32
    return %c0_i32, %c0_i32_0 : i32, i32
  }
  func.func @transform_12(%arg0: i32) -> (i32, i32) {
    %c0_i32 = arith.constant 0 : i32
    %c0_i32_0 = arith.constant 0 : i32
    %c0_i32_1 = arith.constant 0 : i32
    return %c0_i32, %c0_i32_0 : i32, i32
  }
  func.func @transform_13(%arg0: i32) -> (i32, i32) {
    %c0_i32 = arith.constant 0 : i32
    %c0_i32_0 = arith.constant 0 : i32
    %c0_i32_1 = arith.constant 0 : i32
    return %c0_i32, %c0_i32_0 : i32, i32
  }
  func.func @transform_14(%arg0: i32) -> (i32, i32) {
    %c0_i32 = arith.constant 0 : i32
    %c0_i32_0 = arith.constant 0 : i32
    return %c0_i32, %arg0 : i32, i32
  }
}

</mosaic_0001>

<bundles_post_ra>
// kernel: tpu_custom_call.1
= control target key start
LH: loop header
LB: loop body
LE: loop exit
PB: predicated region body
PF: predicated region fallthrough
CT: control target
= control target key end

     0   :  { %v1168_v3 = vmov 0   ;;  %vm113_vm0 = vcmask 1043456   ;;  %s1600_s0 = inlined_call_operand.vmem [shape: bf16[24,256], index: 0, kind: input, shape index: {}]   ;;  %s1601_s1 = inlined_call_operand.vmem [shape: f32[2,256], index: 1, kind: input, shape index: {}]   ;;  %s1602_s2 = inlined_call_operand.vmem [shape: bf16[32,24], index: 2, kind: input, shape index: {}]   ;;  %s1603_s3 = inlined_call_operand.vmem [shape: bf16[32,32], index: 3, kind: input, shape index: {}]   ;;  %s1604_s4 = inlined_call_operand.vmem [shape: bf16[64,32], index: 4, kind: input, shape index: {}]   ;;  %s1605_s5 = inlined_call_operand.vmem [shape: bf16[128,64], index: 5, kind: input, shape index: {}]   ;;  %s1606_s6 = inlined_call_operand.vmem [shape: bf16[3,128], index: 6, kind: input, shape index: {}]   ;;  %s1607_s7 = inlined_call_operand.vmem [shape: f32[32,1], index: 7, kind: input, shape index: {}]   ;;  %s1608_s8 = inlined_call_operand.vmem [shape: f32[32,1], index: 8, kind: input, shape index: {}]   ;;  %s1609_s9 = inlined_call_operand.vmem [shape: f32[64,1], index: 9, kind: input, shape index: {}]   ;;  %s1610_s10 = inlined_call_operand.vmem [shape: f32[128,1], index: 10, kind: input, shape index: {}]   ;;  %s1611_s11 = inlined_call_operand.vmem [shape: f32[3,1], index: 11, kind: input, shape index: {}]   ;;  %s1612_s12 = inlined_call_operand.vmem [shape: f32[2,1], index: 12, kind: input, shape index: {}]   ;;  %s1613_s13 = inlined_call_operand.vmem [shape: f32[2,1], index: 13, kind: input, shape index: {}]   ;;  %s1614_s14 = inlined_call_operand.hbm [shape: f32[4,256], index: 14, kind: output, shape index: {}]  }
   0x1   :  { %v59_v0 = vld [vmem:[%s1607_s7 + $0x10] sm:$0xff]  ;;  %v57_v1 = vld [vmem:[%s1607_s7] sm:$0xff]  ;;  %1012 = vset.pattern.permute.xlu1 %v1168_v3  ;;  %1011 = vset.pattern.permute.xlu0 %v1168_v3  ;;  %v991_v9 = vld [vmem:[%s1600_s0 + $0x4] sm:$0xf0] }
   0x2   :  { %v51_v2 = vld [vmem:[%s1600_s0 + $0x10] sm:$0xff]  ;;  %73 = vperm.xlu0 %1011, %v59_v0   ;;  %63 = vperm.xlu1 %1012, %v57_v1   ;;  %v895_v8 = vld [vmem:[%s1600_s0] sm:$0xf]  ;;  %v990_v10 = vld [vmem:[%s1600_s0 + $0x4] sm:$0xf] }
   0x3   :  { %v98_v4 = vunpack.c.l.b16 %v51_v2  ;;  %v99_v5 = vunpack.c.h.b16 %v51_v2  ;;  %1013 = vset.pattern.permute.xlu2 %v1168_v3  ;;  %v897_v11 = vld [vmem:[%s1600_s0 + $0x8] sm:$0xf0] }
   0x5   :  { %v102_v6 = vpack.c.b16 %v98_v4, %v98_v4  ;;  %v103_v7 = vpack.c.b16 %v99_v5, %v99_v5 }
   0x7   :  { %v115_v12 = vsel %vm113_vm0, %v102_v6, 0  ;;  %v118_v13 = vsel %vm113_vm0, %v103_v7, 0 }
   0x8   :  { %126 = vmatpush.bf16.msra.mxu0 %v115_v12  ;;  %145 = vmatpush.bf16.msra.mxu1 %v118_v13 }
   0x9   :  { %19 = vsyncpa [#allocation3], 0  ;;  %v60_v14 = vld [vmem:[%s1607_s7 + $0x18] sm:$0xff]  ;;  %v58_v15 = vld [vmem:[%s1607_s7 + $0x8] sm:$0xff]  ;;  %v896_v16 = vor.u32 %v991_v9, %v895_v8  ;;  %v900_v17 = vor.u32 %v990_v10, %v897_v11  ;;  %vm106_vm1 = vcmask 195584   ;;  %vm208_vm2 = vcmask 261120  }
   0xa   :  { %78 = vperm.xlu0 %1011, %v60_v14   ;;  %68 = vperm.xlu1 %1012, %v58_v15   ;;  %v992_v18 = vld [vmem:[%s1602_s2] sm:$0xff]  ;;  %v175_v20 = vld [vmem:[%s1608_s8 + $0x8] sm:$0xff]  ;;  %v280_v21 = vld [vmem:[%s1609_s9 + $0x38] sm:$0xff]  ;;  %vm827_vm3 = vcmask 1041408   ;;  %vm864_vm4 = vcmask 1040384   ;;  %vm587_vm6 = vcmask 523264  }
   0xb   :  { %v174_v19 = vld [vmem:[%s1608_s8] sm:$0xff]  ;;  %v993_v23 = vld [vmem:[%s1602_s2 + $0x8] sm:$0xff]  ;;  %v275_v24 = vld [vmem:[%s1609_s9 + $0x10] sm:$0xff] }
   0xc   :  { %127 = vmatpush.bf16.msra.mxu0 %v896_v16  ;;  %146 = vmatpush.bf16.msra.mxu1 %v900_v17  ;;  %v277_v22 = vld [vmem:[%s1609_s9 + $0x20] sm:$0xff]  ;;  %v276_v25 = vld [vmem:[%s1609_s9 + $0x18] sm:$0xff]  ;;  %v274_v26 = vld [vmem:[%s1609_s9 + $0x8] sm:$0xff] }
   0xd   :  { %v465_v27 = vld [vmem:[%s1610_s10 + $0x70] sm:$0xff]  ;;  %v463_v28 = vld [vmem:[%s1610_s10 + $0x60] sm:$0xff]  ;;  %v464_v29 = vld [vmem:[%s1610_s10 + $0x68] sm:$0xff] }
   0xe   :  { %v462_v30 = vld [vmem:[%s1610_s10 + $0x58] sm:$0xff]  ;;  %v459_v31 = vld [vmem:[%s1610_s10 + $0x40] sm:$0xff]  ;;  %v457_v32 = vld [vmem:[%s1610_s10 + $0x30] sm:$0xff] }
   0xf   :  { %901 = vmatmul.msk.bf16.vlgmr.msra.gmra.mxu0 %vm106_vm1, %v992_v18  ;;  %903 = vmatmul.msk.bf16.vlgmr.msra.gmra.mxu1 %vm106_vm1, %v992_v18  ;;  %v458_v33 = vld [vmem:[%s1610_s10 + $0x38] sm:$0xff]  ;;  %v456_v34 = vld [vmem:[%s1610_s10 + $0x28] sm:$0xff]  ;;  %v453_v35 = vld [vmem:[%s1610_s10 + $0x10] sm:$0xff] }
  0x10   :  { %v451_v36 = vld [vmem:[%s1610_s10] sm:$0xff]  ;;  %v452_v37 = vld [vmem:[%s1610_s10 + $0x8] sm:$0xff]  ;;  %v176_v40 = vld [vmem:[%s1608_s8 + $0x10] sm:$0xff] }
  0x11   :  { %v759_v38 = vld [vmem:[%s1611_s11] sm:$0x7]  ;;  %190 = vperm.xlu2 %1013, %v176_v40   ;;  %v177_v41 = vld [vmem:[%s1608_s8 + $0x18] sm:$0xff]  ;;  %v279_v42 = vld [vmem:[%s1609_s9 + $0x30] sm:$0xff] }
  0x12   :  { %180 = vperm.xlu0 %1011, %v174_v19   ;;  %185 = vperm.xlu1 %1012, %v175_v20   ;;  %v791_v39 = vld [vmem:[%s1612_s12] sm:$0x3]  ;;  %v278_v43 = vld [vmem:[%s1609_s9 + $0x28] sm:$0xff]  ;;  %v466_v49 = vld [vmem:[%s1610_s10 + $0x78] sm:$0xff] }
  0x13   :  { %v273_v46 = vld [vmem:[%s1609_s9] sm:$0xff]  ;;  %v461_v54 = vld [vmem:[%s1610_s10 + $0x50] sm:$0xff]  ;;  %v460_v4 = vld [vmem:[%s1610_s10 + $0x48] sm:$0xff] }
  0x14   :  { %v52_v2 = vld [vmem:[%s1601_s1] sm:$0xf]  ;;  %v454_v19 = vld [vmem:[%s1610_s10 + $0x18] sm:$0xff] }
  0x15   :  { %799 = vst [vmem:[#allocation1] ss:$4 sm:$0xff] %v52_v2  ;;  %v455_v12 = vld [vmem:[%s1610_s10 + $0x20] sm:$0xff] }
  0x16   :  { %v994_v18 = vld [vmem:[%s1603_s3] sm:$0xff] }
  0x17   :  { %v792_v20 = vld [vmem:[%s1613_s13] sm:$0x3] }
  0x19   :  { %195 = vperm.xlu2 %1013, %v177_v41  }
  0x1a   :  { %318 = vperm.xlu0 %1011, %v280_v21   ;;  %303 = vperm.xlu1 %1012, %v277_v22   ;;  %v995_v21 = vld [vmem:[%s1603_s3 + $0x8] sm:$0xff]  ;;  %s876_s3 = sshll.u32 %s1614_s14, 4  ;;  %s877_s3 = int_to_ptr.hbm [resolvable:$true] %s876_s3 }
  0x1c   :  { %v1403_v41 = vld.sshfl [vmem:[#allocation1] sm:$0xff pattern:$0x73625140] }
  0x1f   :  { %902 = vmatmul.msk.bf16.gmra.mxu0 %vm106_vm1, %v993_v23  ;;  %904 = vmatmul.msk.bf16.gmra.mxu1 %vm106_vm1, %v993_v23 }
  0x21   :  { %313 = vperm.xlu2 %1013, %v279_v42   ;;  %v1405_v42 = vld.sshfl [vmem:[#allocation1 + $0x8] sm:$0xff pattern:$0x73625140] }
  0x22   :  { %293 = vperm.xlu0 %1011, %v275_v24   ;;  %298 = vperm.xlu1 %1012, %v276_v25  }
  0x29   :  { %308 = vperm.xlu2 %1013, %v278_v43  }
  0x2a   :  { %288 = vperm.xlu0 %1011, %v274_v26   ;;  %539 = vperm.xlu1 %1012, %v465_v27  }
  0x31   :  { %283 = vperm.xlu2 %1013, %v273_v46  }
  0x32   :  { %529 = vperm.xlu0 %1011, %v463_v28   ;;  %534 = vperm.xlu1 %1012, %v464_v29  }
  0x39   :  { %544 = vperm.xlu2 %1013, %v466_v49  }
  0x3a   :  { %524 = vperm.xlu0 %1011, %v462_v30   ;;  %509 = vperm.xlu1 %1012, %v459_v31  }
  0x41   :  { %519 = vperm.xlu2 %1013, %v461_v54  }
  0x42   :  { %499 = vperm.xlu0 %1011, %v457_v32   ;;  %504 = vperm.xlu1 %1012, %v458_v33   ;;  %v808_v32 = vmul.f32 -0.5, %v52_v2  ;;  %v1169_v33 = vmov 269488144  }
  0x49   :  { %514 = vperm.xlu2 %1013, %v460_v4  }
  0x4a   :  { %494 = vperm.xlu0 %1011, %v456_v34   ;;  %479 = vperm.xlu1 %1012, %v453_v35   ;;  %v815_v34 = vunpack.c.l.s4 %v1169_v33 }
  0x4c   :  { %v816_v35 = vunpack.c.0.s8 %v815_v34 }
  0x51   :  { %489 = vperm.xlu2 %1013, %v455_v12  }
  0x52   :  { %469 = vperm.xlu0 %1011, %v451_v36   ;;  %474 = vperm.xlu1 %1012, %v452_v37   ;;  %v809_v36 = vmul.f32 %v808_v32, %v52_v2 }
  0x59   :  { %484 = vperm.xlu2 %1013, %v454_v19  }
  0x5a   :  { %762 = vperm.xlu0 %1011, %v759_v38   ;;  %795 = vperm.xlu1 %1012, %v791_v39  }
  0x61   :  { %812 = vperm.xlu2 %1013, %v792_v20  }
  0x6b   :  { %v191_v22 = vpop.permute.xlu2 %190 }
  0x73   :  { %v196_v23 = vpop.permute.xlu2 %195 }
  0x74   :  { %v74_v50 = vpop.permute.xlu0 %73  ;;  %v64_v51 = vpop.permute.xlu1 %63 }
  0x7b   :  { %v1387_v24 = vpop.permute.xlu2 %313 }
  0x7c   :  { %v79_v57 = vpop.permute.xlu0 %78  ;;  %v69_v58 = vpop.permute.xlu1 %68 }
  0x83   :  { %v1389_v25 = vpop.permute.xlu2 %308 }
  0x84   :  { %v181_v12 = vpop.permute.xlu0 %180 }
  0x8b   :  { %v1391_v26 = vpop.permute.xlu2 %283 }
  0x8c   :  { %v129_v44 = vpop.f32.mrf.mxu0  ;;  %v148_v45 = vpop.f32.mrf.mxu1 }
  0x8d   :  { %v130_v1 = vadd.f32 %v129_v44, %v64_v51  ;;  %v149_v3 = vadd.f32 %v148_v45, %v64_v51 }
  0x93   :  { %v1393_v27 = vpop.permute.xlu2 %544 }
  0x94   :  { %v131_v47 = vpop.f32.mrf.mxu0  ;;  %v150_v48 = vpop.f32.mrf.mxu1 }
  0x95   :  { %v132_v61 = vadd.f32 %v131_v47, %v69_v58  ;;  %v151_v0 = vadd.f32 %v150_v48, %v69_v58 }
  0x9b   :  { %v1395_v28 = vpop.permute.xlu2 %519 }
  0x9c   :  { %v134_v52 = vpop.f32.mrf.mxu0  ;;  %v153_v53 = vpop.f32.mrf.mxu1 }
  0x9d   :  { %v135_v55 = vadd.f32 %v134_v52, %v74_v50  ;;  %v154_v56 = vadd.f32 %v153_v53, %v74_v50 }
  0x9f   :  { %1014 = vtanh.f32 %v135_v55 }
  0xa0   :  { %1016 = vtanh.f32 %v154_v56 }
  0xa3   :  { %v1397_v29 = vpop.permute.xlu2 %514 }
  0xa4   :  { %v136_v59 = vpop.f32.mrf.mxu0  ;;  %v155_v60 = vpop.f32.mrf.mxu1 }
  0xa5   :  { %v137_v62 = vadd.f32 %v136_v59, %v79_v57  ;;  %v156_v63 = vadd.f32 %v155_v60, %v79_v57  ;;  %v1015_v5 = vpop.eup %1014 }
  0xa6   :  { %v1017_v6 = vpop.eup %1016 }
  0xa7   :  { %1018 = vtanh.f32 %v137_v62 }
  0xa8   :  { %1020 = vtanh.f32 %v156_v63 }
  0xa9   :  { %1022 = vtanh.f32 %v132_v61  ;;  %v855_v61 = vlaneseq }
  0xaa   :  { %1024 = vtanh.f32 %v151_v0 }
  0xab   :  { %1026 = vtanh.f32 %v130_v1  ;;  %v1399_v30 = vpop.permute.xlu2 %489  ;;  %vm1407_vm5 = vcmp.lt.s32.totalorder %v855_v61, 256 }
  0xac   :  { %1028 = vtanh.f32 %v149_v3 }
  0xad   :  { %v1019_v7 = vpop.eup %1018 }
  0xae   :  { %v1021_v8 = vpop.eup %1020  ;;  %v172_v9 = vpack.c.bf16 %v1019_v7, %v1015_v5  ;;  %v186_v7 = vpop.permute.xlu1 %185 }
  0xaf   :  { %v1023_v10 = vpop.eup %1022  ;;  %v173_v11 = vpack.c.bf16 %v1021_v8, %v1017_v6 }
  0xb0   :  { %v1025_v13 = vpop.eup %1024  ;;  %221 = vmatpush.bf16.msrb.mxu0 %v172_v9 }
  0xb1   :  { %v1027_v14 = vpop.eup %1026  ;;  %240 = vmatpush.bf16.msrb.mxu1 %v173_v11 }
  0xb2   :  { %v1029_v15 = vpop.eup %1028  ;;  %v170_v16 = vpack.c.bf16 %v1023_v10, %v1027_v14 }
  0xb3   :  { %v171_v17 = vpack.c.bf16 %v1025_v13, %v1029_v15  ;;  %v1401_v31 = vpop.permute.xlu2 %484 }
  0xb4   :  { %222 = vmatpush.bf16.msrb.mxu0 %v170_v16 }
  0xb5   :  { %241 = vmatpush.bf16.msrb.mxu1 %v171_v17 }
  0xb7   :  { %913 = vmatmul.msk.bf16.vlgmr.msrb.gmra.mxu0 %vm208_vm2, %v994_v18 }
  0xb8   :  { %915 = vmatmul.msk.bf16.vlgmr.msrb.gmra.mxu1 %vm208_vm2, %v994_v18 }
  0xbb   :  { %v813_v37 = vpop.permute.xlu2 %812 }
  0xbc   :  { %v817_v38 = vperm.slane %v813_v37, %v816_v35  ;;  %v996_v37 = vld [vmem:[%s1604_s4] sm:$0xff] }
  0xbe   :  { %v819_v39 = vsub.f32 %v809_v36, %v817_v38  ;;  %v997_v38 = vld [vmem:[%s1604_s4 + $0x8] sm:$0xff] }
  0xc0   :  { %v989_v40 = vadd.f32 -0.9189385, %v819_v39  ;;  %v998_v39 = vld [vmem:[%s1604_s4 + $0x10] sm:$0xff] }
  0xc2   :  { %822 = vst [vmem:[#allocation1] ss:$4 sm:$0xff] %v989_v40  ;;  %v999_v40 = vld [vmem:[%s1604_s4 + $0x18] sm:$0xff] }
  0xc7   :  { %914 = vmatmul.msk.bf16.gmra.mxu0 %vm208_vm2, %v995_v21 }
  0xc8   :  { %916 = vmatmul.msk.bf16.gmra.mxu1 %vm208_vm2, %v995_v21 }
  0xc9   :  { %v824_v43 = vld.sshfl [vmem:[#allocation1 + $0x8] sm:$0xff pattern:$0x73625140]  ;;  %v823_v45 = vld.sshfl [vmem:[#allocation1] sm:$0xff pattern:$0x73625140] }
  0xca   :  { %v835_v44 = vsel %vm827_vm3, %v824_v43, 0.0  ;;  %v828_v47 = vsel %vm827_vm3, %v823_v45, 0.0 }
  0xcb   :  { %v836_v46 = vrot.slane %v835_v44, 4  ;;  %v829_v48 = vrot.slane %v828_v47, 4 }
  0xcd   :  { %v837_v49 = vadd.f32 %v836_v46, %v835_v44  ;;  %v830_v50 = vadd.f32 %v829_v48, %v828_v47 }
  0xcf   :  { %v838_v51 = vrot.slane %v837_v49, 2  ;;  %v831_v52 = vrot.slane %v830_v50, 2 }
  0xd1   :  { %v839_v53 = vadd.f32 %v838_v51, %v837_v49  ;;  %v832_v56 = vadd.f32 %v831_v52, %v830_v50 }
  0xd3   :  { %v840_v57 = vrot.slane %v839_v53, 1  ;;  %v833_v58 = vrot.slane %v832_v56, 1 }
  0xd5   :  { %v841_v59 = vadd.f32 %v840_v57, %v839_v53  ;;  %v834_v60 = vadd.f32 %v833_v58, %v832_v56  ;;  %v304_v58 = vpop.permute.xlu1 %303 }
  0xd7   :  { %v863_v62 = vrot.slane %v841_v59, 7 }
  0xd9   :  { %v865_v0 = vsel %vm864_vm4, %v834_v60, %v863_v62 }
  0xda   :  { %868 = vst.msk [vmem:[#allocation2 + $0x3] ss:$4 sm:$0x3] %vm1407_vm5, %v865_v0 }
 0x134   :  { %v224_v54 = vpop.f32.mrf.mxu0 }
 0x135   :  { %v243_v55 = vpop.f32.mrf.mxu1  ;;  %v225_v15 = vadd.f32 %v224_v54, %v181_v12 }
 0x136   :  { %v244_v16 = vadd.f32 %v243_v55, %v181_v12  ;;  %v319_v55 = vpop.permute.xlu0 %318 }
 0x13c   :  { %v226_v1 = vpop.f32.mrf.mxu0 }
 0x13d   :  { %v245_v2 = vpop.f32.mrf.mxu1  ;;  %v227_v9 = vadd.f32 %v226_v1, %v186_v7 }
 0x13e   :  { %v246_v13 = vadd.f32 %v245_v2, %v186_v7  ;;  %v294_v60 = vpop.permute.xlu0 %293 }
 0x144   :  { %v229_v3 = vpop.f32.mrf.mxu0 }
 0x145   :  { %v248_v4 = vpop.f32.mrf.mxu1  ;;  %v230_v5 = vadd.f32 %v229_v3, %v191_v22 }
 0x146   :  { %v249_v6 = vadd.f32 %v248_v4, %v191_v22  ;;  %v289_v12 = vpop.permute.xlu0 %288 }
 0x147   :  { %1030 = vtanh.f32 %v230_v5 }
 0x148   :  { %1032 = vtanh.f32 %v249_v6  ;;  %v299_v6 = vpop.permute.xlu1 %298 }
 0x14c   :  { %v231_v8 = vpop.f32.mrf.mxu0 }
 0x14d   :  { %v232_v10 = vadd.f32 %v231_v8, %v196_v23  ;;  %v250_v11 = vpop.f32.mrf.mxu1  ;;  %v1031_v17 = vpop.eup %1030 }
 0x14e   :  { %v251_v14 = vadd.f32 %v250_v11, %v196_v23  ;;  %v1033_v18 = vpop.eup %1032 }
 0x14f   :  { %1034 = vtanh.f32 %v232_v10 }
 0x150   :  { %1036 = vtanh.f32 %v251_v14 }
 0x151   :  { %1038 = vtanh.f32 %v227_v9 }
 0x152   :  { %1040 = vtanh.f32 %v246_v13 }
 0x153   :  { %1042 = vtanh.f32 %v225_v15 }
 0x154   :  { %1044 = vtanh.f32 %v244_v16 }
 0x155   :  { %v1035_v19 = vpop.eup %1034 }
 0x156   :  { %v1037_v20 = vpop.eup %1036  ;;  %v271_v21 = vpack.c.bf16 %v1035_v19, %v1031_v17 }
 0x157   :  { %v1039_v22 = vpop.eup %1038  ;;  %v272_v32 = vpack.c.bf16 %v1037_v20, %v1033_v18 }
 0x158   :  { %v1041_v33 = vpop.eup %1040  ;;  %359 = vmatpush.bf16.msra.mxu0 %v271_v21 }
 0x159   :  { %v1043_v34 = vpop.eup %1042  ;;  %388 = vmatpush.bf16.msra.mxu1 %v272_v32 }
 0x15a   :  { %v1045_v23 = vpop.eup %1044  ;;  %v269_v35 = vpack.c.bf16 %v1039_v22, %v1043_v34 }
 0x15b   :  { %v270_v36 = vpack.c.bf16 %v1041_v33, %v1045_v23 }
 0x15c   :  { %360 = vmatpush.bf16.msra.mxu0 %v269_v35 }
 0x15d   :  { %389 = vmatpush.bf16.msra.mxu1 %v270_v36 }
 0x15f   :  { %933 = vmatmul.msk.bf16.vlgmr.msra.gmra.mxu0 %vm208_vm2, %v996_v37 }
 0x160   :  { %937 = vmatmul.msk.bf16.vlgmr.msra.gmra.mxu1 %vm208_vm2, %v996_v37 }
 0x16f   :  { %934 = vmatmul.msk.bf16.gmra.mxu0 %vm208_vm2, %v997_v38 }
 0x170   :  { %938 = vmatmul.msk.bf16.gmra.mxu1 %vm208_vm2, %v997_v38 }
 0x17f   :  { %935 = vmatmul.msk.bf16.gmra.mxu0 %vm208_vm2, %v998_v39 }
 0x180   :  { %939 = vmatmul.msk.bf16.gmra.mxu1 %vm208_vm2, %v998_v39 }
 0x18f   :  { %936 = vmatmul.msk.bf16.gmra.mxu0 %vm208_vm2, %v999_v40 }
 0x190   :  { %940 = vmatmul.msk.bf16.gmra.mxu1 %vm208_vm2, %v999_v40 }
 0x1dc   :  { %v362_v43 = vpop.f32.mrf.mxu0 }
 0x1dd   :  { %v391_v44 = vpop.f32.mrf.mxu1  ;;  %v363_v19 = vadd.f32 %v362_v43, %v1391_v26 }
 0x1de   :  { %v392_v22 = vadd.f32 %v391_v44, %v1391_v26 }
 0x1e4   :  { %v364_v45 = vpop.f32.mrf.mxu0 }
 0x1e5   :  { %v393_v46 = vpop.f32.mrf.mxu1 }
 0x1e6   :  { %v394_v16 = vadd.f32 %v393_v46, %v289_v12 }
 0x1ec   :  { %v367_v47 = vpop.f32.mrf.mxu0 }
 0x1ed   :  { %v396_v48 = vpop.f32.mrf.mxu1  ;;  %v368_v10 = vadd.f32 %v367_v47, %v294_v60 }
 0x1ee   :  { %v397_v13 = vadd.f32 %v396_v48, %v294_v60  ;;  %v1000_v48 = vld [vmem:[%s1605_s5] sm:$0xff] }
 0x1f4   :  { %v369_v49 = vpop.f32.mrf.mxu0 }
 0x1f5   :  { %v398_v50 = vpop.f32.mrf.mxu1  ;;  %v370_v8 = vadd.f32 %v369_v49, %v299_v6  ;;  %v1001_v49 = vld [vmem:[%s1605_s5 + $0x8] sm:$0xff] }
 0x1f6   :  { %v399_v9 = vadd.f32 %v398_v50, %v299_v6  ;;  %v1002_v50 = vld [vmem:[%s1605_s5 + $0x10] sm:$0xff] }
 0x1fc   :  { %v372_v51 = vpop.f32.mrf.mxu0 }
 0x1fd   :  { %v401_v52 = vpop.f32.mrf.mxu1  ;;  %v373_v5 = vadd.f32 %v372_v51, %v304_v58  ;;  %v1003_v51 = vld [vmem:[%s1605_s5 + $0x18] sm:$0xff] }
 0x1fe   :  { %v402_v7 = vadd.f32 %v401_v52, %v304_v58  ;;  %v1004_v52 = vld [vmem:[%s1605_s5 + $0x20] sm:$0xff] }
 0x204   :  { %v374_v53 = vpop.f32.mrf.mxu0 }
 0x205   :  { %v403_v54 = vpop.f32.mrf.mxu1  ;;  %v375_v0 = vadd.f32 %v374_v53, %v1389_v25  ;;  %v1005_v53 = vld [vmem:[%s1605_s5 + $0x28] sm:$0xff] }
 0x206   :  { %v404_v3 = vadd.f32 %v403_v54, %v1389_v25  ;;  %v365_v25 = vadd.f32 %v364_v45, %v289_v12  ;;  %v1469_v54 = vpop.permute.xlu1 %539 }
 0x20c   :  { %v377_v56 = vpop.f32.mrf.mxu0 }
 0x20d   :  { %v406_v57 = vpop.f32.mrf.mxu1  ;;  %v378_v59 = vadd.f32 %v377_v56, %v1387_v24  ;;  %v1474_v56 = vpop.permute.xlu0 %529 }
 0x20e   :  { %v407_v61 = vadd.f32 %v406_v57, %v1387_v24  ;;  %v1478_v57 = vpop.permute.xlu1 %534 }
 0x20f   :  { %1046 = vtanh.f32 %v378_v59  ;;  %v1007_v59 = vld [vmem:[%s1605_s5 + $0x38] sm:$0xff] }
 0x210   :  { %1048 = vtanh.f32 %v407_v61 }
 0x214   :  { %v379_v62 = vpop.f32.mrf.mxu0 }
 0x215   :  { %v380_v1 = vadd.f32 %v379_v62, %v319_v55  ;;  %v408_v2 = vpop.f32.mrf.mxu1  ;;  %v1047_v24 = vpop.eup %1046 }
 0x216   :  { %v409_v4 = vadd.f32 %v408_v2, %v319_v55  ;;  %v1049_v11 = vpop.eup %1048  ;;  %v1006_v55 = vld [vmem:[%s1605_s5 + $0x30] sm:$0xff]  ;;  %v1480_v58 = vpop.permute.xlu0 %524 }
 0x217   :  { %1050 = vtanh.f32 %v380_v1  ;;  %v1485_v60 = vpop.permute.xlu1 %509 }
 0x218   :  { %1052 = vtanh.f32 %v409_v4 }
 0x219   :  { %1054 = vtanh.f32 %v375_v0 }
 0x21a   :  { %1056 = vtanh.f32 %v404_v3 }
 0x21b   :  { %1058 = vtanh.f32 %v373_v5 }
 0x21c   :  { %1060 = vtanh.f32 %v402_v7 }
 0x21d   :  { %v1051_v14 = vpop.eup %1050  ;;  %1062 = vtanh.f32 %v370_v8 }
 0x21e   :  { %v1053_v15 = vpop.eup %1052  ;;  %1064 = vtanh.f32 %v399_v9  ;;  %v449_v17 = vpack.c.bf16 %v1051_v14, %v1047_v24  ;;  %v1489_v61 = vpop.permute.xlu0 %499 }
 0x21f   :  { %v1055_v18 = vpop.eup %1054  ;;  %1066 = vtanh.f32 %v368_v10  ;;  %v450_v20 = vpack.c.bf16 %v1053_v15, %v1049_v11  ;;  %v1491_v62 = vpop.permute.xlu1 %504 }
 0x220   :  { %v1057_v21 = vpop.eup %1056  ;;  %1068 = vtanh.f32 %v397_v13  ;;  %616 = vmatpush.bf16.msra.mxu2 %v449_v17 }
 0x221   :  { %v1059_v32 = vpop.eup %1058  ;;  %1070 = vtanh.f32 %v365_v25  ;;  %665 = vmatpush.bf16.msra.mxu3 %v450_v20 }
 0x222   :  { %v1061_v33 = vpop.eup %1060  ;;  %1072 = vtanh.f32 %v394_v16  ;;  %v447_v34 = vpack.c.bf16 %v1055_v18, %v1059_v32 }
 0x223   :  { %v1063_v23 = vpop.eup %1062  ;;  %1074 = vtanh.f32 %v363_v19  ;;  %v448_v35 = vpack.c.bf16 %v1057_v21, %v1061_v33 }
 0x224   :  { %v1065_v36 = vpop.eup %1064  ;;  %1076 = vtanh.f32 %v392_v22  ;;  %617 = vmatpush.bf16.msra.mxu2 %v447_v34 }
 0x225   :  { %v1067_v37 = vpop.eup %1066  ;;  %666 = vmatpush.bf16.msra.mxu3 %v448_v35 }
 0x226   :  { %v1069_v38 = vpop.eup %1068  ;;  %v445_v39 = vpack.c.bf16 %v1063_v23, %v1067_v37  ;;  %v495_v0 = vpop.permute.xlu0 %494 }
 0x227   :  { %v1071_v40 = vpop.eup %1070  ;;  %v446_v26 = vpack.c.bf16 %v1065_v36, %v1069_v38  ;;  %v480_v1 = vpop.permute.xlu1 %479 }
 0x228   :  { %v1073_v43 = vpop.eup %1072  ;;  %618 = vmatpush.bf16.msra.mxu2 %v445_v39 }
 0x229   :  { %v1075_v44 = vpop.eup %1074  ;;  %667 = vmatpush.bf16.msra.mxu3 %v446_v26 }
 0x22a   :  { %v1077_v45 = vpop.eup %1076  ;;  %v443_v46 = vpack.c.bf16 %v1071_v40, %v1075_v44 }
 0x22b   :  { %v444_v47 = vpack.c.bf16 %v1073_v43, %v1077_v45 }
 0x22c   :  { %619 = vmatpush.bf16.msra.mxu2 %v443_v46 }
 0x22d   :  { %668 = vmatpush.bf16.msra.mxu3 %v444_v47 }
 0x22e   :  { %v470_v4 = vpop.permute.xlu0 %469 }
 0x22f   :  { %973 = vmatmul.msk.bf16.vlgmr.msra.gmra.mxu2 %vm587_vm6, %v1000_v48  ;;  %v475_v7 = vpop.permute.xlu1 %474 }
 0x230   :  { %981 = vmatmul.msk.bf16.vlgmr.msra.gmra.mxu3 %vm587_vm6, %v1000_v48 }
 0x23f   :  { %974 = vmatmul.msk.bf16.gmra.mxu2 %vm587_vm6, %v1001_v49 }
 0x240   :  { %982 = vmatmul.msk.bf16.gmra.mxu3 %vm587_vm6, %v1001_v49 }
 0x24f   :  { %975 = vmatmul.msk.bf16.gmra.mxu2 %vm587_vm6, %v1002_v50 }
 0x250   :  { %983 = vmatmul.msk.bf16.gmra.mxu3 %vm587_vm6, %v1002_v50 }
 0x25f   :  { %976 = vmatmul.msk.bf16.gmra.mxu2 %vm587_vm6, %v1003_v51 }
 0x260   :  { %984 = vmatmul.msk.bf16.gmra.mxu3 %vm587_vm6, %v1003_v51 }
 0x26f   :  { %977 = vmatmul.msk.bf16.gmra.mxu2 %vm587_vm6, %v1004_v52 }
 0x270   :  { %985 = vmatmul.msk.bf16.gmra.mxu3 %vm587_vm6, %v1004_v52 }
 0x27f   :  { %978 = vmatmul.msk.bf16.gmra.mxu2 %vm587_vm6, %v1005_v53 }
 0x280   :  { %986 = vmatmul.msk.bf16.gmra.mxu3 %vm587_vm6, %v1005_v53 }
 0x28f   :  { %979 = vmatmul.msk.bf16.gmra.mxu2 %vm587_vm6, %v1006_v55 }
 0x290   :  { %987 = vmatmul.msk.bf16.gmra.mxu3 %vm587_vm6, %v1006_v55 }
 0x29f   :  { %980 = vmatmul.msk.bf16.gmra.mxu2 %vm587_vm6, %v1007_v59 }
 0x2a0   :  { %988 = vmatmul.msk.bf16.gmra.mxu3 %vm587_vm6, %v1007_v59 }
 0x2b2   :  { %v621_v2 = vpop.f32.mrf.mxu2 }
 0x2b3   :  { %v670_v3 = vpop.f32.mrf.mxu3  ;;  %v622_v5 = vadd.f32 %v621_v2, %v470_v4 }
 0x2b4   :  { %v671_v6 = vadd.f32 %v670_v3, %v470_v4 }
 0x2b5   :  { %1078 = vtanh.f32 %v622_v5 }
 0x2b6   :  { %1080 = vtanh.f32 %v671_v6 }
 0x2ba   :  { %v623_v8 = vpop.f32.mrf.mxu2 }
 0x2bb   :  { %v624_v9 = vadd.f32 %v623_v8, %v475_v7  ;;  %v672_v24 = vpop.f32.mrf.mxu3  ;;  %v1493_v11 = vpop.eup %1078 }
 0x2bc   :  { %v673_v10 = vadd.f32 %v672_v24, %v475_v7  ;;  %v1495_v12 = vpop.eup %1080 }
 0x2bd   :  { %1082 = vtanh.f32 %v624_v9 }
 0x2be   :  { %1084 = vtanh.f32 %v673_v10 }
 0x2c2   :  { %v626_v13 = vpop.f32.mrf.mxu2 }
 0x2c3   :  { %v1497_v14 = vpop.eup %1082  ;;  %v675_v25 = vpop.f32.mrf.mxu3  ;;  %v627_v18 = vadd.f32 %v626_v13, %v480_v1 }
 0x2c4   :  { %v1499_v15 = vpop.eup %1084  ;;  %v743_v16 = vpack.c.bf16 %v1497_v14, %v1493_v11  ;;  %v676_v19 = vadd.f32 %v675_v25, %v480_v1 }
 0x2c5   :  { %v744_v17 = vpack.c.bf16 %v1499_v15, %v1495_v12  ;;  %1086 = vtanh.f32 %v627_v18 }
 0x2c6   :  { %1088 = vtanh.f32 %v676_v19 }
 0x2ca   :  { %v628_v20 = vpop.f32.mrf.mxu2 }
 0x2cb   :  { %v629_v21 = vadd.f32 %v628_v20, %v1401_v31  ;;  %v677_v22 = vpop.f32.mrf.mxu3  ;;  %v1507_v33 = vpop.eup %1086 }
 0x2cc   :  { %v678_v32 = vadd.f32 %v677_v22, %v1401_v31  ;;  %v1509_v34 = vpop.eup %1088 }
 0x2cd   :  { %1090 = vtanh.f32 %v629_v21 }
 0x2ce   :  { %1092 = vtanh.f32 %v678_v32 }
 0x2d2   :  { %v631_v23 = vpop.f32.mrf.mxu2 }
 0x2d3   :  { %v1511_v35 = vpop.eup %1090  ;;  %v680_v36 = vpop.f32.mrf.mxu3  ;;  %v632_v31 = vadd.f32 %v631_v23, %v1399_v30 }
 0x2d4   :  { %v1513_v37 = vpop.eup %1092  ;;  %v745_v38 = vpack.c.bf16 %v1511_v35, %v1507_v33  ;;  %v681_v40 = vadd.f32 %v680_v36, %v1399_v30  ;;  %v796_v33 = vpop.permute.xlu1 %795 }
 0x2d5   :  { %v746_v39 = vpack.c.bf16 %v1513_v37, %v1509_v34  ;;  %1094 = vtanh.f32 %v632_v31  ;;  %v763_v35 = vpop.permute.xlu0 %762  ;;  %v805_v37 = vmul.f32 %v1405_v42, %v796_v33  ;;  %v804_v11 = vmul.f32 %v1403_v41, %v796_v33 }
 0x2d6   :  { %1096 = vtanh.f32 %v681_v40 }
 0x2da   :  { %v633_v26 = vpop.f32.mrf.mxu2 }
 0x2db   :  { %v634_v43 = vadd.f32 %v633_v26, %v495_v0  ;;  %v682_v44 = vpop.f32.mrf.mxu3  ;;  %v1521_v46 = vpop.eup %1094 }
 0x2dc   :  { %v683_v45 = vadd.f32 %v682_v44, %v495_v0  ;;  %v1523_v47 = vpop.eup %1096 }
 0x2dd   :  { %1098 = vtanh.f32 %v634_v43 }
 0x2de   :  { %1100 = vtanh.f32 %v683_v45 }
 0x2e2   :  { %v636_v48 = vpop.f32.mrf.mxu2 }
 0x2e3   :  { %v1525_v49 = vpop.eup %1098  ;;  %v685_v50 = vpop.f32.mrf.mxu3  ;;  %v637_v53 = vadd.f32 %v636_v48, %v1489_v61 }
 0x2e4   :  { %v1527_v51 = vpop.eup %1100  ;;  %v747_v30 = vpack.c.bf16 %v1525_v49, %v1521_v46  ;;  %v686_v55 = vadd.f32 %v685_v50, %v1489_v61  ;;  %v742_v46 = vld [vmem:[%s1606_s6] sm:$0x3]  ;;  %s1170_s6 = smov [#allocation2]  }
 0x2e5   :  { %v748_v52 = vpack.c.bf16 %v1527_v51, %v1523_v47  ;;  %1102 = vtanh.f32 %v637_v53  ;;  %s874_s20 = sshll.u32 %s1170_s6, 4  ;;  %s875_s20 = int_to_ptr.vmem [resolvable:$true] %s874_s20 }
 0x2e6   :  { %1104 = vtanh.f32 %v686_v55 }
 0x2ea   :  { %v638_v59 = vpop.f32.mrf.mxu2 }
 0x2eb   :  { %v639_v0 = vadd.f32 %v638_v59, %v1491_v62  ;;  %v687_v1 = vpop.f32.mrf.mxu3  ;;  %v1537_v3 = vpop.eup %1102 }
 0x2ec   :  { %v688_v2 = vadd.f32 %v687_v1, %v1491_v62  ;;  %v1539_v4 = vpop.eup %1104 }
 0x2ed   :  { %1106 = vtanh.f32 %v639_v0 }
 0x2ee   :  { %1108 = vtanh.f32 %v688_v2 }
 0x2f2   :  { %v641_v5 = vpop.f32.mrf.mxu2 }
 0x2f3   :  { %v1541_v6 = vpop.eup %1106  ;;  %v690_v7 = vpop.f32.mrf.mxu3 }
 0x2f4   :  { %v1543_v8 = vpop.eup %1108  ;;  %v749_v61 = vpack.c.bf16 %v1541_v6, %v1537_v3 }
 0x2f5   :  { %v750_v9 = vpack.c.bf16 %v1543_v8, %v1539_v4 }
 0x2fa   :  { %v643_v24 = vpop.f32.mrf.mxu2 }
 0x2fb   :  { %v692_v62 = vpop.f32.mrf.mxu3  ;;  %v644_v2 = vadd.f32 %v643_v24, %v1397_v29 }
 0x302   :  { %v646_v10 = vpop.f32.mrf.mxu2 }
 0x303   :  { %v695_v13 = vpop.f32.mrf.mxu3  ;;  %v647_v0 = vadd.f32 %v646_v10, %v1395_v28 }
 0x304   :  { %v696_v1 = vadd.f32 %v695_v13, %v1395_v28 }
 0x30a   :  { %v648_v25 = vpop.f32.mrf.mxu2 }
 0x30b   :  { %v697_v18 = vpop.f32.mrf.mxu3 }
 0x30c   :  { %v698_v55 = vadd.f32 %v697_v18, %v1480_v58 }
 0x312   :  { %v651_v19 = vpop.f32.mrf.mxu2 }
 0x313   :  { %v700_v20 = vpop.f32.mrf.mxu3  ;;  %v652_v50 = vadd.f32 %v651_v19, %v1474_v56  ;;  %v693_v19 = vadd.f32 %v692_v62, %v1397_v29 }
 0x314   :  { %v701_v53 = vadd.f32 %v700_v20, %v1474_v56 }
 0x31a   :  { %v653_v21 = vpop.f32.mrf.mxu2 }
 0x31b   :  { %v702_v22 = vpop.f32.mrf.mxu3  ;;  %v654_v26 = vadd.f32 %v653_v21, %v1478_v57  ;;  %v691_v21 = vadd.f32 %v690_v7, %v1485_v60 }
 0x31c   :  { %v703_v45 = vadd.f32 %v702_v22, %v1478_v57 }
 0x322   :  { %v656_v32 = vpop.f32.mrf.mxu2 }
 0x323   :  { %v705_v23 = vpop.f32.mrf.mxu3  ;;  %v657_v36 = vadd.f32 %v656_v32, %v1469_v54 }
 0x324   :  { %v706_v31 = vadd.f32 %v705_v23, %v1469_v54  ;;  %v649_v54 = vadd.f32 %v648_v25, %v1480_v58  ;;  %v642_v58 = vadd.f32 %v641_v5, %v1485_v60 }
 0x325   :  { %1110 = vtanh.f32 %v657_v36 }
 0x326   :  { %1112 = vtanh.f32 %v706_v31 }
 0x32a   :  { %v658_v40 = vpop.f32.mrf.mxu2 }
 0x32b   :  { %v659_v43 = vadd.f32 %v658_v40, %v1393_v27  ;;  %v707_v44 = vpop.f32.mrf.mxu3  ;;  %v1111_v59 = vpop.eup %1110 }
 0x32c   :  { %v708_v48 = vadd.f32 %v707_v44, %v1393_v27  ;;  %v1113_v57 = vpop.eup %1112 }
 0x32d   :  { %1114 = vtanh.f32 %v659_v43 }
 0x32e   :  { %1116 = vtanh.f32 %v708_v48 }
 0x32f   :  { %1118 = vtanh.f32 %v654_v26 }
 0x330   :  { %1120 = vtanh.f32 %v703_v45 }
 0x331   :  { %1122 = vtanh.f32 %v652_v50 }
 0x332   :  { %1124 = vtanh.f32 %v701_v53 }
 0x333   :  { %v1115_v27 = vpop.eup %1114  ;;  %1126 = vtanh.f32 %v649_v54 }
 0x334   :  { %v1117_v56 = vpop.eup %1116  ;;  %1128 = vtanh.f32 %v698_v55  ;;  %v757_v25 = vpack.c.bf16 %v1115_v27, %v1111_v59 }
 0x335   :  { %v1119_v20 = vpop.eup %1118  ;;  %1130 = vtanh.f32 %v647_v0  ;;  %v758_v18 = vpack.c.bf16 %v1117_v56, %v1113_v57 }
 0x336   :  { %v1121_v10 = vpop.eup %1120  ;;  %1132 = vtanh.f32 %v696_v1  ;;  %765 = vmatpush.bf16.msrb.mxu0 %v757_v25 }
 0x337   :  { %v1123_v28 = vpop.eup %1122  ;;  %1134 = vtanh.f32 %v644_v2  ;;  %778 = vmatpush.bf16.msrb.mxu1 %v758_v18 }
 0x338   :  { %v1125_v24 = vpop.eup %1124  ;;  %1136 = vtanh.f32 %v693_v19  ;;  %v755_v13 = vpack.c.bf16 %v1119_v20, %v1123_v28 }
 0x339   :  { %v1127_v22 = vpop.eup %1126  ;;  %1138 = vtanh.f32 %v642_v58  ;;  %v756_v29 = vpack.c.bf16 %v1121_v10, %v1125_v24 }
 0x33a   :  { %v1129_v62 = vpop.eup %1128  ;;  %1140 = vtanh.f32 %v691_v21  ;;  %766 = vmatpush.bf16.msrb.mxu0 %v755_v13 }
 0x33b   :  { %v1131_v5 = vpop.eup %1130  ;;  %779 = vmatpush.bf16.msrb.mxu1 %v756_v29 }
 0x33c   :  { %v1133_v32 = vpop.eup %1132  ;;  %v753_v23 = vpack.c.bf16 %v1127_v22, %v1131_v5 }
 0x33d   :  { %v1135_v36 = vpop.eup %1134  ;;  %v754_v60 = vpack.c.bf16 %v1129_v62, %v1133_v32 }
 0x33e   :  { %v1137_v7 = vpop.eup %1136  ;;  %767 = vmatpush.bf16.msrb.mxu0 %v753_v23 }
 0x33f   :  { %v1139_v31 = vpop.eup %1138  ;;  %780 = vmatpush.bf16.msrb.mxu1 %v754_v60 }
 0x340   :  { %v1141_v40 = vpop.eup %1140  ;;  %v751_v26 = vpack.c.bf16 %v1135_v36, %v1139_v31 }
 0x341   :  { %v752_v43 = vpack.c.bf16 %v1137_v7, %v1141_v40 }
 0x342   :  { %768 = vmatpush.bf16.msrb.mxu0 %v751_v26 }
 0x343   :  { %781 = vmatpush.bf16.msrb.mxu1 %v752_v43 }
 0x346   :  { %769 = vmatpush.bf16.msrb.mxu0 %v749_v61 }
 0x347   :  { %782 = vmatpush.bf16.msrb.mxu1 %v750_v9 }
 0x34a   :  { %770 = vmatpush.bf16.msrb.mxu0 %v747_v30 }
 0x34b   :  { %783 = vmatpush.bf16.msrb.mxu1 %v748_v52 }
 0x34e   :  { %771 = vmatpush.bf16.msrb.mxu0 %v745_v38 }
 0x34f   :  { %784 = vmatpush.bf16.msrb.mxu1 %v746_v39 }
 0x352   :  { %772 = vmatpush.bf16.msrb.mxu0 %v743_v16 }
 0x353   :  { %785 = vmatpush.bf16.msrb.mxu1 %v744_v17 }
 0x355   :  { %773 = vmatmul.bf16.vlgmr.msrb.gmra.mxu0 %v742_v46 }
 0x356   :  { %786 = vmatmul.bf16.vlgmr.msrb.gmra.mxu1 %v742_v46 }
 0x3d2   :  { %v774_v38 = vpop.f32.mrf.mxu0 }
 0x3d3   :  { %v775_v47 = vadd.f32 %v774_v38, %v763_v35  ;;  %v787_v34 = vpop.f32.mrf.mxu1 }
 0x3d4   :  { %v788_v39 = vadd.f32 %v787_v34, %v763_v35 }
 0x3d5   :  { %850 = vst [vmem:[#allocation1] sm:$0xff] %v775_v47  ;;  %v806_v16 = vadd.f32 %v804_v11, %v775_v47 }
 0x3d6   :  { %v807_v14 = vadd.f32 %v805_v37, %v788_v39  ;;  %851 = vst [vmem:[#allocation1 + $0x9] sm:$0xff] %v788_v39 }
 0x3d8   :  { %v844_v49 = vrot.slane %v807_v14, 4 }
 0x3da   :  { %v845_v12 = vsel %vm113_vm0, %v806_v16, %v844_v49  ;;  %v776_v15 = vpop.f32.mrf.mxu0 }
 0x3db   :  { %847 = vst [vmem:[#allocation2] sm:$0x33] %v845_v12  ;;  %v789_v17 = vpop.f32.mrf.mxu1 }
 0x3dd   :  { %v853_v42 = vld [vmem:[#allocation1 + $0x2] ss:$9 sm:$0xff] }
 0x3de   :  { %860 = vst.msk [vmem:[#allocation2 + $0x2] ss:$4 sm:$0x3] %vm1407_vm5, %v853_v42 }
 0x3df   :  { %879 = dma.vmem_to_hbm [thread:$0]  %s875_s20, 128, %s877_s3, [#allocation3]  }
 0x3e0   :  { %1166 = dma.done.wait [#allocation3], 128  }
 0x3e1   :  { %1167 = vsyncadd [#allocation3], 4294967168 }
 0x3e2   :  { %884 = vsyncpa [#allocation3], 1 }

</bundles_post_ra>
